<compile_context>
chip_gen: v6e
topology: v6e:2x2x1
jax: 0.10.0
libtpu: 0.0.40
codegen_flags: <defaults>
</compile_context>

<pallas_src>
import functools

import jax
import jax.numpy as jnp
from jax.experimental import pallas as pl
from jax.experimental.pallas import tpu as pltpu


# ----------------------------------------------------------------------------
# helpers
# ----------------------------------------------------------------------------

def _round_up(n, m):
    return ((n + m - 1) // m) * m


def _vmem_budget():
    """Conservative per-core VMEM budget (bytes) for vmem_limit_bytes."""
    cap = 64 * 1024 * 1024          # fallback: v7x physical per-TC
    try:
        cap = int(pltpu.get_tpu_info().vmem_capacity_bytes)
    except Exception:
        pass
    return max(16 * 1024 * 1024, int(cap * 0.7))


def _fused_vmem_bytes(tb, L, C, H, itemsize):
    """Estimate double-buffered VMEM footprint of the fused path."""
    x_bytes = 2 * tb * L * C * itemsize                  # input slabs
    o_bytes = 2 * tb * L * C * itemsize                  # output slabs
    # bf16 mask block is lane-padded 1 -> 128 and sublane-padded to 16.
    m_bytes = 2 * tb * max(_round_up(L, 16), 16) * 128 * 2
    w_bytes = 2 * 2 * C * H * 4                          # both weights, f32
    return x_bytes + o_bytes + m_bytes + w_bytes + (4 << 20)  # headroom


# ----------------------------------------------------------------------------
# fused (one-pass, batch-packed) kernel
# ----------------------------------------------------------------------------

def _fused_kernel(x_ref, mask_ref, w0t_ref, w1t_ref, out_ref):
    # x_ref   : (TB, L, C)  input dtype (f32 or bf16)
    # mask_ref: (TB, L, 1)  bf16 (0.0 / 1.0)
    # w0t_ref : (C, H)      f32 (fc_0 weight, pre-transposed), resident
    # w1t_ref : (H, C)      f32 (fc_1 weight, pre-transposed), resident
    # out_ref : (TB, L, C)  input dtype
    x = x_ref[...].astype(jnp.float32)                    # (TB, L, C)
    m = mask_ref[...].astype(jnp.float32)                 # (TB, L, 1)
    valid = m > 0.5

    # Masked mean over the sequence axis (== scatter_mean over batch ids).
    cnt = jnp.maximum(jnp.sum(m, axis=1), 1.0)            # (TB, 1)
    x_sum = jnp.sum(jnp.where(valid, x, 0.0), axis=1)     # (TB, C)
    x_mean = x_sum / cnt                                  # off the hot path

    # Masked max (== scatter_max); finite sentinel avoids -inf propagation.
    neg = jnp.finfo(jnp.float32).min
    x_max = jnp.max(jnp.where(valid, x, neg), axis=1)     # (TB, C)

    # Fused MLP on stacked [mean; max] rows: one pair of MXU matmuls, M=2*TB.
    stacked = jnp.concatenate([x_mean, x_max], axis=0)    # (2*TB, C)
    h = jnp.maximum(
        jnp.dot(stacked, w0t_ref[...], preferred_element_type=jnp.float32),
        0.0)
    z = jnp.dot(h, w1t_ref[...], preferred_element_type=jnp.float32)
    tb = z.shape[0] // 2
    a = jax.nn.sigmoid(z[:tb] + z[tb:])                   # (TB, C) f32

    # Final scale in the I/O dtype: bf16-native multiply on bf16 inputs
    # (halves vreg/VMEM pressure on the hottest pass), f32 otherwise.
    a_bc = a[:, None, :].astype(out_ref.dtype)            # (TB, 1, C)
    out_ref[...] = (x_ref[...] * a_bc).astype(out_ref.dtype)


def _channel_attention_fused(x, attention_mask, w0, w1, *, tb, vmem_limit,
                             donate_x=False):
    B, L, C = x.shape
    H = int(w0.shape[0])
    w0t = jnp.asarray(w0, jnp.float32).T                  # (C, H)
    w1t = jnp.asarray(w1, jnp.float32).T                  # (H, C)
    # bf16 mask (values 0/1 are exact); L on sublanes matches x's layout.
    mask3 = attention_mask.astype(jnp.bfloat16).reshape(B, L, 1)

    kwargs = {}
    if donate_x:
        kwargs["input_output_aliases"] = {0: 0}

    return pl.pallas_call(
        _fused_kernel,
        out_shape=jax.ShapeDtypeStruct((B, L, C), x.dtype),
        grid=(B // tb,),
        in_specs=[
            pl.BlockSpec((tb, L, C), lambda b: (b, 0, 0)),   # x slab
            pl.BlockSpec((tb, L, 1), lambda b: (b, 0, 0)),   # mask (bf16)
            pl.BlockSpec((C, H), lambda b: (0, 0)),          # w0t resident
            pl.BlockSpec((H, C), lambda b: (0, 0)),          # w1t resident
        ],
        out_specs=pl.BlockSpec((tb, L, C), lambda b: (b, 0, 0)),
        compiler_params=pltpu.CompilerParams(
            dimension_semantics=("parallel",),               # megacore on v7x
            vmem_limit_bytes=int(vmem_limit),
        ),
        **kwargs,
    )(x, mask3, w0t, w1t)


# ----------------------------------------------------------------------------
# two-pass (reduce-then-scale) kernels for large L*C
# ----------------------------------------------------------------------------

def _reduce_mlp_kernel(x_ref, mask_ref, w0t_ref, w1t_ref, a_ref,
                       sum_sc, max_sc, cnt_sc, *, seq_len, tl):
    # grid = (B, nL); L axis is "arbitrary" (accumulation), batch "parallel".
    li = pl.program_id(1)
    neg = jnp.finfo(jnp.float32).min

    @pl.when(li == 0)
    def _():
        sum_sc[...] = jnp.zeros_like(sum_sc)
        max_sc[...] = jnp.full_like(max_sc, neg)
        cnt_sc[...] = jnp.zeros_like(cnt_sc)

    x = x_ref[0].astype(jnp.float32)                       # (tL, C)
    m = mask_ref[0].astype(jnp.float32)                    # (tL, 1)
    # In-bounds guard so partial last blocks never contaminate the reduction.
    row = jax.lax.broadcasted_iota(jnp.int32, (tl, 1), 0) + li * tl
    valid = (m > 0.5) & (row < seq_len)

    cnt_sc[...] += jnp.sum(valid.astype(jnp.float32), axis=0, keepdims=True)
    sum_sc[...] += jnp.sum(jnp.where(valid, x, 0.0), axis=0, keepdims=True)
    max_sc[...] = jnp.maximum(
        max_sc[...],
        jnp.max(jnp.where(valid, x, neg), axis=0, keepdims=True))

    @pl.when(li == pl.num_programs(1) - 1)
    def _():
        cnt = jnp.maximum(cnt_sc[...], 1.0)                # (1, 1)
        x_mean = sum_sc[...] / cnt                         # (1, C)
        stacked = jnp.concatenate([x_mean, max_sc[...]], axis=0)   # (2, C)
        h = jnp.maximum(
            jnp.dot(stacked, w0t_ref[...], preferred_element_type=jnp.float32),
            0.0)
        z = jnp.dot(h, w1t_ref[...], preferred_element_type=jnp.float32)
        a_ref[0] = jax.nn.sigmoid(z[0:1] + z[1:2])         # (1, C) f32


def _scale_kernel(x_ref, a_ref, out_ref):
    # x_ref: (1, tL, C); a_ref: (1, 1, C) f32; out_ref: (1, tL, C)
    a = a_ref[...].astype(out_ref.dtype)                   # bf16-native on bf16
    out_ref[...] = (x_ref[...] * a).astype(out_ref.dtype)


def channel_attention_two_pass(x, attention_mask, w0, w1, *, tl=None,
                               budget=None, donate_x=False):
    """Reduce-then-scale variant for per-batch slabs that exceed VMEM."""
    B, L, C = x.shape
    H = int(w0.shape[0])
    itemsize = jnp.dtype(x.dtype).itemsize
    if budget is None:
        budget = _vmem_budget()
    if tl is None:
        tl = (2 << 20) // max(C * itemsize, 1)             # ~2 MiB x tiles
    tl = max(16, min(_round_up(tl, 16), _round_up(L, 16)))
    nl = pl.cdiv(L, tl)

    w0t = jnp.asarray(w0, jnp.float32).T                   # (C, H)
    w1t = jnp.asarray(w1, jnp.float32).T                   # (H, C)
    mask3 = attention_mask.astype(jnp.bfloat16).reshape(B, L, 1)

    # Pass 1: masked sum / max / count accumulation + tiny MLP -> a (B, 1, C).
    a = pl.pallas_call(
        functools.partial(_reduce_mlp_kernel, seq_len=L, tl=tl),
        out_shape=jax.ShapeDtypeStruct((B, 1, C), jnp.float32),
        grid=(B, nl),
        in_specs=[
            pl.BlockSpec((1, tl, C), lambda b, l: (b, l, 0)),
            pl.BlockSpec((1, tl, 1), lambda b, l: (b, l, 0)),
            pl.BlockSpec((C, H), lambda b, l: (0, 0)),
            pl.BlockSpec((H, C), lambda b, l: (0, 0)),
        ],
        out_specs=pl.BlockSpec((1, 1, C), lambda b, l: (b, 0, 0)),
        scratch_shapes=[
            pltpu.VMEM((1, C), jnp.float32),               # running sum
            pltpu.VMEM((1, C), jnp.float32),               # running max
            pltpu.VMEM((1, 1), jnp.float32),               # running count
        ],
        compiler_params=pltpu.CompilerParams(
            dimension_semantics=("parallel", "arbitrary"),
            vmem_limit_bytes=int(budget),
        ),
    )(x, mask3, w0t, w1t)

    # Pass 2: re-stream x in tL chunks and scale by a (fully parallel grid).
    kwargs = {}
    if donate_x:
        kwargs["input_output_aliases"] = {0: 0}
    return pl.pallas_call(
        _scale_kernel,
        out_shape=jax.ShapeDtypeStruct((B, L, C), x.dtype),
        grid=(B, nl),
        in_specs=[
            pl.BlockSpec((1, tl, C), lambda b, l: (b, l, 0)),
            pl.BlockSpec((1, 1, C), lambda b, l: (b, 0, 0)),
        ],
        out_specs=pl.BlockSpec((1, tl, C), lambda b, l: (b, l, 0)),
        compiler_params=pltpu.CompilerParams(
            dimension_semantics=("parallel", "parallel"),
            vmem_limit_bytes=int(budget),
        ),
        **kwargs,
    )(x, a)


# ----------------------------------------------------------------------------
# dispatcher
# ----------------------------------------------------------------------------

def channel_attention(x, attention_mask, w0, w1, *, donate_x=False):
    """x: (B, L, C); attention_mask: (B, L) {0,1};
    w0: (C//r, C) fc_0 weight; w1: (C, C//r) fc_1 weight (nn.Linear layout)."""
    B, L, C = x.shape
    H = int(w0.shape[0])
    itemsize = jnp.dtype(x.dtype).itemsize
    budget = _vmem_budget()

    # Batch-packing: target ~1-2 MiB blocks; keep >= 2 grid steps so both v7x
    # TensorCores always have work; TB must divide B and fit the VMEM budget.
    per_batch = L * C * itemsize
    tb = max(1, min(B, (2 << 20) // max(per_batch, 1)))
    if B >= 2:
        tb = min(tb, max(1, B // 2))
    while B % tb:
        tb -= 1
    while tb > 1 and _fused_vmem_bytes(tb, L, C, H, itemsize) > budget:
        tb -= 1
        while B % tb:
            tb -= 1

    if _fused_vmem_bytes(tb, L, C, H, itemsize) <= budget:
        return _channel_attention_fused(x, attention_mask, w0, w1,
                                        tb=tb, vmem_limit=budget,
                                        donate_x=donate_x)
    # Per-batch slab too large even double-buffered at TB=1 -> two-pass.
    return channel_attention_two_pass(x, attention_mask, w0, w1,
                                      budget=budget, donate_x=donate_x)


# ----------------------------------------------------------------------------
# pure-JAX reference
# ----------------------------------------------------------------------------

def channel_attention_ref(x, attention_mask, w0, w1):
    """Pure-JAX reference mirroring the PyTorch module (f32)."""
    xf = x.astype(jnp.float32)
    m = attention_mask.astype(jnp.float32)[:, :, None]
    cnt = jnp.sum(m, axis=1)
    x_mean = jnp.sum(xf * m, axis=1) / cnt
    x_max = jnp.max(jnp.where(m > 0.5, xf, -jnp.inf), axis=1)

    def mlp(v):
        return jax.nn.relu(v @ w0.T) @ w1.T

    a = jax.nn.sigmoid(mlp(x_mean) + mlp(x_max))
    return xf * a[:, None, :]


# ----------------------------------------------------------------------------
# self-test
# ----------------------------------------------------------------------------

if __name__ == "__main__":
    root_key = jax.random.PRNGKey(0)

    def run_case(B, L, C, reduction, dtype, force_two_pass=False, tl=None):
        H = C // reduction
        kx, km, k0, k1 = jax.random.split(
            jax.random.fold_in(root_key, B * 10000 + L * 10 + (dtype == jnp.bfloat16)), 4)
        x = jax.random.normal(kx, (B, L, C), dtype=jnp.float32)
        mask = (jax.random.uniform(km, (B, L)) > 0.4).astype(jnp.int32)
        mask = mask.at[:, 0].set(1)            # every row has a valid token
        bound0 = 1.0 / jnp.sqrt(C)
        bound1 = 1.0 / jnp.sqrt(H)
        w0 = jax.random.uniform(k0, (H, C), minval=-bound0, maxval=bound0,
                                dtype=jnp.float32)
        w1 = jax.random.uniform(k1, (C, H), minval=-bound1, maxval=bound1,
                                dtype=jnp.float32)

        xd = x.astype(dtype)
        if force_two_pass:
            out = channel_attention_two_pass(xd, mask, w0, w1, tl=tl)
        else:
            out = channel_attention(xd, mask, w0, w1)
        out = jax.block_until_ready(out)

        ref = channel_attention_ref(xd, mask, w0, w1)
        assert out.shape == (B, L, C)
        assert out.dtype == dtype
        tol = 1e-5 if dtype == jnp.float32 else 1e-1
        assert jnp.allclose(out.astype(jnp.float32), ref, atol=tol, rtol=tol), \
            (B, L, C, str(dtype))

    # Fused batch-packed path (TB=2, grid of 2 steps) — f32 and bf16 I/O.
    run_case(4, 16, 128, 16, jnp.float32)
    run_case(4, 16, 128, 16, jnp.bfloat16)

    # Two-pass reduce-then-scale path forced at small shapes (3 L-tiles of 16)
    # to validate the accumulation + scale pipeline used for huge L*C.
    run_case(2, 48, 128, 16, jnp.float32, force_two_pass=True, tl=16)
    run_case(2, 48, 128, 16, jnp.bfloat16, force_two_pass=True, tl=16)

    print("KERNEL_OK")
</pallas_src>

<mosaic_0001>
module attributes {stable_mosaic.version = 11 : i64} {
  func.func @_fused_kernel(%arg0: i32, %arg1: memref<2x16x128xf32, #tpu.memory_space<vmem>>, %arg2: memref<2x16x1xbf16, #tpu.memory_space<vmem>>, %arg3: memref<128x8xf32, #tpu.memory_space<vmem>>, %arg4: memref<8x128xf32, #tpu.memory_space<vmem>>, %arg5: memref<2x16x128xf32, #tpu.memory_space<vmem>>) attributes {dimension_semantics = [#tpu.dimension_semantics<parallel>], iteration_bounds = array<i64: 2>, scalar_prefetch = 0 : i64, scratch_operands = 0 : i64, tpu.core_type = #tpu.core_type<tc>, window_params = [{transform_indices = @transform_0, window_bounds = array<i64: 2, 16, 128>}, {transform_indices = @transform_1, window_bounds = array<i64: 2, 16, 1>}, {pipeline_mode = #tpu.pipeline_mode<synchronous>, transform_indices = @transform_2, window_bounds = array<i64: 128, 8>}, {pipeline_mode = #tpu.pipeline_mode<synchronous>, transform_indices = @transform_3, window_bounds = array<i64: 8, 128>}, {transform_indices = @transform_4, window_bounds = array<i64: 2, 16, 128>}]} {
    %c0 = arith.constant 0 : index
    %c0_0 = arith.constant 0 : index
    %c0_1 = arith.constant 0 : index
    %0 = vector.load %arg1[%c0, %c0_0, %c0_1] : memref<2x16x128xf32, #tpu.memory_space<vmem>>, vector<2x16x128xf32>
    %c0_2 = arith.constant 0 : index
    %c0_3 = arith.constant 0 : index
    %c0_4 = arith.constant 0 : index
    %1 = vector.load %arg2[%c0_2, %c0_3, %c0_4] : memref<2x16x1xbf16, #tpu.memory_space<vmem>>, vector<2x16x1xbf16>
    %2 = arith.extf %1 : vector<2x16x1xbf16> to vector<2x16x1xf32>
    %cst = arith.constant 5.000000e-01 : f32
    %3 = vector.broadcast %cst : f32 to vector<2x16x1xf32>
    %4 = arith.cmpf ogt, %2, %3 : vector<2x16x1xf32>
    %cst_5 = arith.constant dense<0.000000e+00> : vector<2x1xf32>
    %5 = vector.multi_reduction <add>, %2, %cst_5 [1] : vector<2x16x1xf32> to vector<2x1xf32>
    %cst_6 = arith.constant 1.000000e+00 : f32
    %6 = vector.broadcast %cst_6 : f32 to vector<2x1xf32>
    %7 = arith.maximumf %5, %6 : vector<2x1xf32>
    %cst_7 = arith.constant 0.000000e+00 : f32
    %8 = vector.shape_cast %4 : vector<2x16x1xi1> to vector<2x16x1xi1>
    %9 = vector.broadcast %8 : vector<2x16x1xi1> to vector<2x16x128xi1>
    %10 = vector.broadcast %cst_7 : f32 to vector<2x16x128xf32>
    %11 = arith.select %9, %0, %10 : vector<2x16x128xi1>, vector<2x16x128xf32>
    %cst_8 = arith.constant dense<0.000000e+00> : vector<2x128xf32>
    %12 = vector.multi_reduction <add>, %11, %cst_8 [1] : vector<2x16x128xf32> to vector<2x128xf32>
    %13 = vector.broadcast %7 : vector<2x1xf32> to vector<2x128xf32>
    %14 = arith.divf %12, %13 : vector<2x128xf32>
    %cst_9 = arith.constant -3.40282347E+38 : f32
    %15 = vector.shape_cast %4 : vector<2x16x1xi1> to vector<2x16x1xi1>
    %16 = vector.broadcast %15 : vector<2x16x1xi1> to vector<2x16x128xi1>
    %17 = vector.broadcast %cst_9 : f32 to vector<2x16x128xf32>
    %18 = arith.select %16, %0, %17 : vector<2x16x128xi1>, vector<2x16x128xf32>
    %cst_10 = arith.constant dense<0xFF800000> : vector<2x128xf32>
    %19 = vector.multi_reduction <maximumf>, %18, %cst_10 [1] : vector<2x16x128xf32> to vector<2x128xf32>
    %20 = tpu.concatenate %14, %19 in 0 : vector<2x128xf32>, vector<2x128xf32> -> vector<4x128xf32>
    %c0_11 = arith.constant 0 : index
    %c0_12 = arith.constant 0 : index
    %21 = vector.load %arg3[%c0_11, %c0_12] : memref<128x8xf32, #tpu.memory_space<vmem>>, vector<128x8xf32>
    %cst_13 = arith.constant dense<0.000000e+00> : vector<4x8xf32>
    %22 = tpu.matmul %20, %21, %cst_13 {dimension_numbers = #tpu.dot_dimension_numbers<[1], [0], [0], [1], [0, 0, 1, 1], [], []>} : vector<4x128xf32>, vector<128x8xf32>, vector<4x8xf32> -> vector<4x8xf32>
    %cst_14 = arith.constant 0.000000e+00 : f32
    %23 = vector.broadcast %cst_14 : f32 to vector<4x8xf32>
    %24 = arith.maximumf %22, %23 : vector<4x8xf32>
    %c0_15 = arith.constant 0 : index
    %c0_16 = arith.constant 0 : index
    %25 = vector.load %arg4[%c0_15, %c0_16] : memref<8x128xf32, #tpu.memory_space<vmem>>, vector<8x128xf32>
    %cst_17 = arith.constant dense<0.000000e+00> : vector<4x128xf32>
    %26 = tpu.matmul %24, %25, %cst_17 {dimension_numbers = #tpu.dot_dimension_numbers<[1], [0], [0], [1], [0, 0, 1, 1], [], []>} : vector<4x8xf32>, vector<8x128xf32>, vector<4x128xf32> -> vector<4x128xf32>
    %27 = vector.extract_strided_slice %26 {offsets = [0, 0], sizes = [2, 128], strides = [1, 1]} : vector<4x128xf32> to vector<2x128xf32>
    %28 = vector.extract_strided_slice %26 {offsets = [2, 0], sizes = [2, 128], strides = [1, 1]} : vector<4x128xf32> to vector<2x128xf32>
    %29 = arith.addf %27, %28 : vector<2x128xf32>
    %30 = arith.negf %29 : vector<2x128xf32>
    %31 = math.exp %30 : vector<2x128xf32>
    %cst_18 = arith.constant 1.000000e+00 : f32
    %32 = vector.broadcast %cst_18 : f32 to vector<2x128xf32>
    %33 = arith.addf %32, %31 : vector<2x128xf32>
    %34 = arith.divf %32, %33 : vector<2x128xf32>
    %35 = vector.shape_cast %34 : vector<2x128xf32> to vector<2x1x128xf32>
    %c0_19 = arith.constant 0 : index
    %c0_20 = arith.constant 0 : index
    %c0_21 = arith.constant 0 : index
    %36 = vector.load %arg1[%c0_19, %c0_20, %c0_21] : memref<2x16x128xf32, #tpu.memory_space<vmem>>, vector<2x16x128xf32>
    %37 = vector.broadcast %35 : vector<2x1x128xf32> to vector<2x16x128xf32>
    %38 = arith.mulf %36, %37 : vector<2x16x128xf32>
    %c0_22 = arith.constant 0 : index
    %c0_23 = arith.constant 0 : index
    %c0_24 = arith.constant 0 : index
    %39 = vector.load %arg5[%c0_22, %c0_23, %c0_24] : memref<2x16x128xf32, #tpu.memory_space<vmem>>, vector<2x16x128xf32>
    tpu.vector_store %arg5[%c0_22, %c0_23, %c0_24], %38 {strides = array<i32>} : memref<2x16x128xf32, #tpu.memory_space<vmem>>, vector<2x16x128xf32>,
    return
  }
  func.func @transform_0(%arg0: i32) -> (i32, i32, i32) {
    %c0_i32 = arith.constant 0 : i32
    %c0_i32_0 = arith.constant 0 : i32
    %c0_i32_1 = arith.constant 0 : i32
    return %arg0, %c0_i32, %c0_i32_0 : i32, i32, i32
  }
  func.func @transform_1(%arg0: i32) -> (i32, i32, i32) {
    %c0_i32 = arith.constant 0 : i32
    %c0_i32_0 = arith.constant 0 : i32
    %c0_i32_1 = arith.constant 0 : i32
    return %arg0, %c0_i32, %c0_i32_0 : i32, i32, i32
  }
  func.func @transform_2(%arg0: i32) -> (i32, i32) {
    %c0_i32 = arith.constant 0 : i32
    %c0_i32_0 = arith.constant 0 : i32
    %c0_i32_1 = arith.constant 0 : i32
    return %c0_i32, %c0_i32_0 : i32, i32
  }
  func.func @transform_3(%arg0: i32) -> (i32, i32) {
    %c0_i32 = arith.constant 0 : i32
    %c0_i32_0 = arith.constant 0 : i32
    %c0_i32_1 = arith.constant 0 : i32
    return %c0_i32, %c0_i32_0 : i32, i32
  }
  func.func @transform_4(%arg0: i32) -> (i32, i32, i32) {
    %c0_i32 = arith.constant 0 : i32
    %c0_i32_0 = arith.constant 0 : i32
    %c0_i32_1 = arith.constant 0 : i32
    return %arg0, %c0_i32, %c0_i32_0 : i32, i32, i32
  }
}

</mosaic_0001>

<bundles_post_ra>
// kernel: tpu_custom_call.1
= control target key start
LH: loop header
LB: loop body
LE: loop exit
PB: predicated region body
PF: predicated region fallthrough
CT: control target
= control target key end

     0   :  { %9 = vsyncpa [#allocation3], 0  ;;  %s1090_s0 = inlined_call_operand.vmem [shape: f32[4,16,128], index: 0, kind: input, shape index: {}]   ;;  %s1091_s1 = inlined_call_operand.vmem [shape: bf16[4,16,1], index: 1, kind: input, shape index: {}]   ;;  %s1092_s2 = inlined_call_operand.vmem [shape: f32[128,8], index: 2, kind: input, shape index: {}]   ;;  %s1093_s3 = inlined_call_operand.vmem [shape: f32[8,128], index: 3, kind: input, shape index: {}]   ;;  %s1094_s4 = inlined_call_operand.hbm [shape: f32[4,16,128], index: 4, kind: output, shape index: {}]  }
   0x1   :  { %11 = vsyncpa [#allocation3 + $0x1], 0  ;;  %s888_s15 = smov 0   ;;  %s890_s16 = smov 0  }
   0x2   :  { %s892_s17 = smov 0   ;;  %s894_s18 = smov 0  }
   0x3 LB: > { %s909_s19 = sadd.s32 4294967295, %s854_s18   ;;  %s648_s20 = sadd.s32 4294967294, %s854_s18   ;;  %s854_s18 = sphi %s894_s18, %s1100_s18   ;;  %s850_s17 = sphi %s892_s17, %s1099_s17   ;;  %s846_s16 = sphi %s890_s16, %s1098_s16   ;;  %s842_s15 = sphi %s888_s15, %s1097_s15  }
   0x4   : > { %s913_s21 = sadd.s32 1, %s854_s18   ;;  %s118_s22 = sadd.s32 1, %s850_s17 }
   0x5   : > { %s115_s23 = ssub.s32 %s854_s18, %s913_s21  ;;  %p128_p0 = scmp.ne.s32.totalorder %s850_s17, %s846_s16 }
   0x6   : > { %p116_p1 = scmp.eq.s32.totalorder %s115_s23, 0  ;;  %p129_p2 = scmp.eq.s32.totalorder %s909_s19, 1 }
   0x7   : > { %p134_p3 = scmp.ne.s32.totalorder %s846_s16, %s842_s15  ;;  %p135_p4 = scmp.eq.s32.totalorder %s648_s20, 1 }
   0x8   : > { %s924_s24 = scalar_select %p116_p1, %s850_s17, %s118_s22  }
   0x9   : > { %p926_p5 = por %p129_p2, %p128_p0  ;;  %p930_p6 = por %p135_p4, %p134_p3 }
   0xa   : > { %p651_p7 = scmp.ge.s32.totalorder %s854_s18, 1  ;;  %p179_p8 = scmp.lt.s32.totalorder %s854_s18, 3 }
   0xc   : > { %p180_p9 = pnand %p651_p7, %p179_p8 }
   0xd   : > { %s653_s27 = sshll.u32 (!%p180_p9), %s909_s19, 1  ;;  %s209_s11 = sand.u32 (!%p180_p9), 1, %s846_s16  }
   0xe   : > { %183 = sbr.rel (%p180_p9) target bundleno = 634 (0x27a), region = 36  ;;  %p213_p10 = scmp.lt.s32.totalorder (!%p180_p9), %s653_s27, 3 }
   0xf   : > { %s652_s12 = sshll.u32 (!%p180_p9), %s209_s11, 5  ;;  %s670_s13 = sshll.u32 (!%p180_p9), %s909_s19, 9 }
  0x10   : > { %s211_s14 = scalar_lea.vmem (!%p180_p9), [#allocation2], %s652_s12  ;;  %s1050_s19 = scalar_lea.sflag (!%p180_p9), [#allocation3], %s209_s11 }
  0x11   : > { %s574_s20 = sshll.u32 (!%p180_p9), %s211_s14, 4  ;;  %s860_s30 = smov (!%p180_p9), [#allocation2]   ;;  %s1046_s20 = int_to_ptr.vmem [resolvable:$true] %s574_s20 }
  0x12   : > { %s794_s29 = scalar_lea.vmem (!%p180_p9), %s1046_s20, 512 }
  0x13   : > { %v856_v0 = vmov 0   ;;  %s1102_s27 = smov (!%p213_p10, %s653_s27), 3  ;;  %vm243_vm0 = vcmask 7168   ;;  %v361_v7 = vld [vmem:[%s1092_s2 + $0x78] sm:$0xff]  ;;  %v857_v10 = vmov 0.0   ;;  %v360_v19 = vld [vmem:[%s1092_s2 + $0x70] sm:$0xff]  ;;  %p795_p11 = scmp.ne.s32.totalorder %s1046_s20, %s794_s29 }
  0x14   : > { %785 = vset.pattern.permute.xlu1 %v856_v0  ;;  %784 = vset.pattern.permute.xlu0 %v856_v0  ;;  %s668_s28 = sshll.u32 %s1102_s27, 3  ;;  %v359_v22 = vld [vmem:[%s1092_s2 + $0x68] sm:$0xff]  ;;  %v358_v25 = vld [vmem:[%s1092_s2 + $0x60] sm:$0xff]  ;;  %v357_v28 = vld [vmem:[%s1092_s2 + $0x58] sm:$0xff]  ;;  %vm858_vm5 = vmmov 0   ;;  %s667_s6 = sshll.u32 %s1102_s27, 4 }
  0x15   : > { %s224_s5 = scalar_lea.vmem %s1091_s1, %s668_s28  ;;  %699 = vmatprep.subr.mxu0 %v857_v10  ;;  %734 = vmatprep.subr.mxu1 %v857_v10  ;;  %v356_v31 = vld [vmem:[%s1092_s2 + $0x50] sm:$0xff]  ;;  %v355_v34 = vld [vmem:[%s1092_s2 + $0x48] sm:$0xff]  ;;  %v354_v38 = vld [vmem:[%s1092_s2 + $0x40] sm:$0xff]  ;;  %s217_s9 = scalar_lea.vmem %s1090_s0, %s667_s6  ;;  %vm336_vm10 = vcmask 1041409   ;;  %vm341_vm11 = vcmask 1043459   ;;  %vm344_vm12 = vcmask 1041408  }
  0x16   : > { %v679_v1 = vld [vmem:[%s224_s5 + $0x8] sm:$0xff]   ;;  %v672_v2 = vld [vmem:[%s224_s5] sm:$0xff]   ;;  %700 = vmatpush3.msra.mxu0 %v361_v7  ;;  %v353_v39 = vld [vmem:[%s1092_s2 + $0x38] sm:$0xff]  ;;  %731 = vmatprep.mubr.msk.f32.mxu0 %vm858_vm5, %v857_v10  ;;  %vm434_vm13 = vcmask 64512   ;;  %s1044_s28 = scalar_lea.hbm %s1094_s4, %s670_s13  ;;  %p796_p12 = pnand %p795_p11, %p926_p5 }
  0x17   : > { %v677_v3 = vunpack.c.l.bf16 %v679_v1  ;;  %v673_v4 = vunpack.c.l.bf16 %v672_v2  ;;  %v678_v5 = vunpack.c.h.bf16 %v679_v1  ;;  %v674_v6 = vunpack.c.h.bf16 %v672_v2  ;;  %701 = vmatprep.subr.mxu0 %v857_v10  ;;  %v352_v41 = vld [vmem:[%s1092_s2 + $0x30] sm:$0xff]  ;;  %v351_v42 = vld [vmem:[%s1092_s2 + $0x28] sm:$0xff]  ;;  %736 = vmatprep.mubr.msk.f32.mxu1 %vm858_vm5, %v857_v10  ;;  %v350_v43 = vld [vmem:[%s1092_s2 + $0x20] sm:$0xff]  ;;  %s798_s5 = sshll.u32 %s860_s30, 4  ;;  %s799_s5 = int_to_ptr.vmem [resolvable:$false] %s798_s5 }
  0x18   : > { %702 = vmatpush3.msra.mxu0 %v360_v19  ;;  %v349_v44 = vld [vmem:[%s1092_s2 + $0x18] sm:$0xff]  ;;  %v348_v45 = vld [vmem:[%s1092_s2 + $0x10] sm:$0xff]  ;;  %v347_v46 = vld [vmem:[%s1092_s2 + $0x8] sm:$0xff]  ;;  %p797_p13 = pneg %p796_p12  ;;  %s800_s6 = scalar_lea.vmem %s799_s5, 1024 }
  0x19   : > { %vm241_vm1 = vcmp.gt.f32.partialorder %v677_v3, 0.5  ;;  %v253_v8 = vsel %vm243_vm0, %v677_v3, 0.0  ;;  %vm239_vm2 = vcmp.gt.f32.partialorder %v673_v4, 0.5  ;;  %v244_v9 = vsel %vm243_vm0, %v673_v4, 0.0  ;;  %703 = vmatprep.subr.mxu0 %v857_v10  ;;  %v346_v47 = vld [vmem:[%s1092_s2] sm:$0xff]  ;;  %v1018_v50 = vld [vmem:[%s217_s9 + $0x10] sm:$0xff]  ;;  %p801_p0 = scmp.lt.s32.totalorder %s1046_s20, %s799_s5  ;;  %p802_p1 = scmp.lt.s32.totalorder %s800_s6, %s794_s29 }
  0x1a   : > { %v266_v11 = vsel %vm241_vm1, 1, %v856_v0  ;;  %v264_v12 = vsel %vm239_vm2, 1, %v856_v0  ;;  %vm242_vm3 = vcmp.gt.f32.partialorder %v678_v5, 0.5  ;;  %v254_v13 = vsel %vm243_vm0, %v678_v5, 0.0  ;;  %704 = vmatpush3.msra.mxu0 %v359_v22  ;;  %v1020_v51 = vld [vmem:[%s217_s9] sm:$0xff]  ;;  %v1022_v52 = vld [vmem:[%s217_s9 + $0x18] sm:$0xff] }
  0x1b   : > { %275 = vperm.xlu1 %785, %v266_v11   ;;  %269 = vperm.xlu0 %784, %v264_v12   ;;  %v255_v14 = vadd.f32 %v254_v13, %v253_v8  ;;  %vm240_vm4 = vcmp.gt.f32.partialorder %v674_v6, 0.5  ;;  %v245_v15 = vsel %vm243_vm0, %v674_v6, 0.0  ;;  %v267_v16 = vsel %vm242_vm3, 1, %v856_v0  ;;  %v1024_v53 = vld [vmem:[%s217_s9 + $0x8] sm:$0xff]  ;;  %p803_p2 = por %p802_p1, %p801_p0 }
  0x1c   : > { %v246_v17 = vadd.f32 %v245_v15, %v244_v9  ;;  %v265_v18 = vsel %vm240_vm4, 1, %v856_v0  ;;  %705 = vmatprep.subr.mxu0 %v857_v10 }
  0x1d   : > { %v256_v20 = vrot.slane %v255_v14, 4  ;;  %706 = vmatpush3.msra.mxu0 %v358_v25  ;;  %p804_p3 = pnand %p803_p2, %p797_p13 }
  0x1e   : > { %v247_v21 = vrot.slane %v246_v17, 4  ;;  %707 = vmatprep.subr.mxu0 %v857_v10 }
  0x1f   : > { %278 = vperm.xlu1 %785, %v267_v16   ;;  %272 = vperm.xlu0 %784, %v265_v18   ;;  %v257_v23 = vadd.f32 %v256_v20, %v255_v14 }
  0x20   : > { %v248_v24 = vadd.f32 %v247_v21, %v246_v17  ;;  %708 = vmatpush3.msra.mxu0 %v357_v28 }
  0x21   : > { %v258_v26 = vrot.slane %v257_v23, 2  ;;  %709 = vmatprep.subr.mxu0 %v857_v10 }
  0x22   : > { %v249_v27 = vrot.slane %v248_v24, 2  ;;  %710 = vmatpush3.msra.mxu0 %v356_v31 }
  0x23   : > { %v259_v29 = vadd.f32 %v258_v26, %v257_v23  ;;  %711 = vmatprep.subr.mxu0 %v857_v10 }
  0x24   : > { %v250_v30 = vadd.f32 %v249_v27, %v248_v24  ;;  %712 = vmatpush3.msra.mxu0 %v355_v34 }
  0x25   : > { %v260_v32 = vrot.slane %v259_v29, 1  ;;  %713 = vmatprep.subr.mxu0 %v857_v10 }
  0x26   : > { %v251_v33 = vrot.slane %v250_v30, 1  ;;  %714 = vmatpush3.msra.mxu0 %v354_v38 }
  0x27   : > { %v261_v35 = vadd.f32 %v260_v32, %v259_v29  ;;  %715 = vmatprep.subr.mxu0 %v857_v10 }
  0x28   : > { %v252_v36 = vadd.f32 %v251_v33, %v250_v30  ;;  %716 = vmatpush3.msra.mxu0 %v353_v39 }
  0x29   : > { %v263_v37 = vmax.f32 %v261_v35, 1.0  ;;  %717 = vmatprep.subr.mxu0 %v857_v10 }
  0x2a   : > { %v262_v40 = vmax.f32 %v252_v36, 1.0  ;;  %718 = vmatpush3.msra.mxu0 %v352_v41 }
  0x2b   : > { %309 = vperm.xlu1 %785, %v263_v37   ;;  %719 = vmatprep.subr.mxu0 %v857_v10  ;;  %v433_v37 = vld [vmem:[%s1093_s3] sm:$0xff] }
  0x2c   : > { %304 = vperm.xlu0 %784, %v262_v40   ;;  %720 = vmatpush3.msra.mxu0 %v351_v42 }
  0x2d   : > { %721 = vmatprep.subr.mxu0 %v857_v10  ;;  %735 = vmatpush3.msra.mxu1 %v433_v37 }
  0x2e   : > { %722 = vmatpush3.msra.mxu0 %v350_v43 }
  0x2f   : > { %723 = vmatprep.subr.mxu0 %v857_v10 }
  0x30   : > { %724 = vmatpush3.msra.mxu0 %v349_v44 }
  0x31   : > { %725 = vmatprep.subr.mxu0 %v857_v10 }
  0x32   : > { %726 = vmatpush3.msra.mxu0 %v348_v45 }
  0x33   : > { %727 = vmatprep.subr.mxu0 %v857_v10 }
  0x34   : > { %728 = vmatpush3.msra.mxu0 %v347_v46 }
  0x35   : > { %729 = vmatprep.subr.mxu0 %v857_v10 }
  0x36   : > { %730 = vmatpush3.msra.mxu0 %v346_v47 }
  0x96   : > { %v276_v48 = vpop.permute.xlu1 %275  ;;  %v270_v49 = vpop.permute.xlu0 %269 }
  0x97   : > { %vm282_vm6 = vcmp.eq.s32.totalorder %v276_v48, 1  ;;  %vm280_vm7 = vcmp.eq.s32.totalorder %v270_v49, 1  ;;  %v859_v48 = vmov 1966171168  }
  0x98   : > { %v286_v54 = vsel %vm282_vm6, %v1018_v50, 0.0  ;;  %v318_v55 = vsel %vm282_vm6, %v1018_v50, -3.4028235e+38  ;;  %v284_v56 = vsel %vm280_vm7, %v1020_v51, 0.0  ;;  %v316_v57 = vsel %vm280_vm7, %v1020_v51, -3.4028235e+38 }
  0x99   : > { %v520_v49 = vunpack.c.l.s4 %v859_v48 }
  0x9a   : > { %v279_v58 = vpop.permute.xlu1 %278  ;;  %v273_v59 = vpop.permute.xlu0 %272 }
  0x9b   : > { %vm283_vm8 = vcmp.eq.s32.totalorder %v279_v58, 1  ;;  %vm281_vm9 = vcmp.eq.s32.totalorder %v273_v59, 1 }
  0x9c   : > { %v287_v60 = vsel %vm283_vm8, %v1022_v52, 0.0  ;;  %v319_v61 = vsel %vm283_vm8, %v1022_v52, -3.4028235e+38  ;;  %v285_v62 = vsel %vm281_vm9, %v1024_v53, 0.0  ;;  %v317_v63 = vsel %vm281_vm9, %v1024_v53, -3.4028235e+38 }
  0x9d   : > { %v295_v0 = vadd.f32 %v287_v60, %v286_v54  ;;  %v327_v1 = vmax.f32 %v318_v55, %v319_v61  ;;  %v288_v2 = vadd.f32 %v285_v62, %v284_v56  ;;  %v320_v3 = vmax.f32 %v316_v57, %v317_v63 }
  0x9e   : > { %v522_v54 = vlaneseq  ;;  %v521_v55 = vunpack.c.0.s8 %v520_v49 }
  0x9f   : > { %v296_v4 = vrot.slane %v295_v0, 4  ;;  %v328_v5 = vrot.slane %v327_v1, 4  ;;  %v289_v6 = vrot.slane %v288_v2, 4  ;;  %v321_v7 = vrot.slane %v320_v3, 4 }
  0xa0   : > { %v523_v56 = vshrl.u32 %v522_v54, 7 }
  0xa1   : > { %v297_v8 = vadd.f32 %v296_v4, %v295_v0  ;;  %v329_v9 = vmax.f32 %v327_v1, %v328_v5  ;;  %v290_v10 = vadd.f32 %v289_v6, %v288_v2  ;;  %v322_v11 = vmax.f32 %v320_v3, %v321_v7 }
  0xa2   : > { %v524_v57 = vsub.s32 %v521_v55, %v523_v56  ;;  %v543_v60 = vsub.s32 0, %v523_v56 }
  0xa3   : > { %v298_v14 = vrot.slane %v297_v8, 2  ;;  %v330_v15 = vrot.slane %v329_v9, 2  ;;  %v291_v16 = vrot.slane %v290_v10, 2  ;;  %v323_v17 = vrot.slane %v322_v11, 2 }
  0xa5   : > { %v299_v18 = vadd.f32 %v298_v14, %v297_v8  ;;  %v331_v19 = vmax.f32 %v329_v9, %v330_v15  ;;  %v292_v20 = vadd.f32 %v291_v16, %v290_v10  ;;  %v324_v21 = vmax.f32 %v322_v11, %v323_v17 }
  0xa6   : > { %v310_v12 = vpop.permute.xlu1 %309 }
  0xa7   : > { %v305_v13 = vpop.permute.xlu0 %304  ;;  %786 = vrcp.f32 %v310_v12  ;;  %v300_v22 = vrot.slane %v299_v18, 1  ;;  %v332_v23 = vrot.slane %v331_v19, 1  ;;  %v293_v24 = vrot.slane %v292_v20, 1 }
  0xa8   : > { %788 = vrcp.f32 %v305_v13  ;;  %v325_v25 = vrot.slane %v324_v21, 1 }
  0xa9   : > { %v301_v26 = vadd.f32 %v300_v22, %v299_v18  ;;  %v294_v28 = vadd.f32 %v293_v24, %v292_v20  ;;  %v333_v30 = vmax.f32 %v331_v19, %v332_v23 }
  0xaa   : > { %v326_v29 = vmax.f32 %v324_v21, %v325_v25 }
  0xac   : > { %v342_v35 = vsel %vm341_vm11, %v333_v30, %v326_v29 }
  0xb4   : > { %v787_v27 = vpop.eup %786 }
  0xb5   : > { %v789_v31 = vpop.eup %788  ;;  %v315_v32 = vmul.f32 %v787_v27, %v301_v26 }
  0xb6   : > { %v313_v33 = vmul.f32 %v789_v31, %v294_v28 }
  0xb8   : > { %v337_v34 = vsel %vm336_vm10, %v315_v32, %v313_v33 }
  0xb9   : > { %v345_v36 = vsel %vm344_vm12, %v337_v34, %v342_v35 }
  0xba   : > { %732 = vmatmul.mubr.f32.vlgmr.msra.gmra.mxu0 %v345_v36 }
 0x17a   : > { %v428_v38 = vpop.f32.mrf.mxu0 }
 0x17b   : > { %v432_v39 = vmax.f32 %v428_v38, 0.0 }
 0x17c   : > { %v733_v40 = vpop.f32.mrf.mxu0 }
 0x17d   : > { %737 = vmatmul.mubr.msk.f32.vlgmr.msra.gmra.mxu1 %vm434_vm13, %v432_v39 }
 0x23d   : > { %v504_v41 = vpop.f32.mrf.mxu1 }
 0x23e   : > { %v509_v42 = vrot.slane %v504_v41, 2 }
 0x23f   : > { %v738_v43 = vpop.f32.mrf.mxu1 }
 0x240   : > { %v511_v44 = vadd.f32 %v509_v42, %v504_v41 }
 0x242   : > { %v660_v45 = vmul.f32 -1.442695, %v511_v44 }
 0x244   : > { %790 = vpow2.f32 %v660_v45 }
 0x251   : > { %v791_v46 = vpop.eup %790 }
 0x252   : > { %v515_v47 = vadd.f32 1.0, %v791_v46 }
 0x254   : > { %792 = vrcp.f32 %v515_v47 }
 0x261   : > { %v793_v58 = vpop.eup %792 }
 0x262   : > { %v525_v59 = vrot.slane %v793_v58, %v524_v57 }
 0x264   : > { %v526_v61 = vcombine.high %v525_v59, %v525_v59  ;;  %v533_v62 = vrot.slane %v525_v59, %v524_v57 }
 0x266   : > { %v540_v63 = vrot.slane %v526_v61, %v524_v57  ;;  %v544_v0 = vrot.slane %v533_v62, %v543_v60 }
 0x268   : > { %v548_v1 = vrot.slane %v540_v63, %v543_v60  ;;  %v551_v2 = vmul.f32 %v544_v0, %v1020_v51  ;;  %v552_v3 = vmul.f32 %v544_v0, %v1024_v53 }
 0x26a   : > { %v553_v4 = vmul.f32 %v548_v1, %v1018_v50  ;;  %v554_v5 = vmul.f32 %v548_v1, %v1022_v52  ;;  %555 = vst [vmem:[%s211_s14] sm:$0xff] %v551_v2  ;;  %556 = vst [vmem:[%s211_s14 + $0x8] sm:$0xff] %v552_v3 }
 0x26c   : > { %557 = vst [vmem:[%s211_s14 + $0x10] sm:$0xff] %v553_v4  ;;  %558 = vst [vmem:[%s211_s14 + $0x18] sm:$0xff] %v554_v5 }
 0x26d   : > { %807 = shalt.err (!%p804_p3)
}
 0x26e   : > { %s808_s7 = scalar_lea.hbm %s1044_s28, 512  ;;  %s812_s27 = scalar_lea.hbm %s1094_s4, 1024 }
 0x26f   : > { %p809_p4 = scmp.ne.s32.totalorder %s1044_s28, %s808_s7  ;;  %p813_p9 = scmp.lt.s32.totalorder %s1044_s28, %s1094_s4 }
 0x270   : > { %p814_p10 = scmp.lt.s32.totalorder %s812_s27, %s808_s7 }
 0x271   : > { %p810_p7 = pnand %p809_p4, %p926_p5 }
 0x272   : > { %p815_p11 = por %p814_p10, %p813_p9 }
 0x273   : > { %p811_p8 = pneg %p810_p7 }
 0x275   : > { %p816_p12 = pnand %p815_p11, %p811_p8 }
 0x277   : > { %819 = shalt.err (!%p816_p12)
}
 0x278   : > { %s861_s12 = smov 128   ;;  %s862_s13 = smov 8  }
 0x279   : > { %739 = dma.vmem_to_hbm [thread:$0]  (%p926_p5), %s1046_s20, 512, %s1044_s28, %s1050_s19, %s861_s12, %s861_s12, %s862_s13  }
 0x27a PF: > { %p745_p13 = scmp.ge.s32.totalorder %s854_s18, 2  ;;  %s589_s14 = sand.u32 1, %s842_s15  }
 0x27b   : > { %s590_s22 = scalar_lea.sflag [#allocation3], %s589_s14 }
 0x27c   : > { %p742_p0 = pnand %p745_p13, %p930_p6 }
 0x27e   : > { %p743_p1 = pneg %p742_p0 }
 0x280   : > { %837 = dma.done.wait (%p743_p1), %s590_s22, 512  }
 0x281   : > { %839 = vsyncadd (%p743_p1), %s590_s22, 4294966784  ;;  %p14_p2 = scmp.ge.s32.totalorder %s913_s21, 4   ;;  %s1097_s15 = smov %s846_s16 }
 0x282   : > { %s1098_s16 = smov %s850_s17  ;;  %s1099_s17 = smov %s924_s24 }
 0x283   : > { %s1100_s18 = smov %s913_s21  ;;  %16 = sbr.rel (!%p14_p2) target bundleno = 3 (0x3), region = 74 }
 0x288   :  { %595 = vsyncpa [#allocation3], 1 }
 0x289   :  { %597 = vsyncpa [#allocation3 + $0x1], 1 }

</bundles_post_ra>
